<compile_context>
chip_gen: v5e
topology: v5e:2x2
jax: 0.10.0
libtpu: 0.0.40
codegen_flags: <defaults>
</compile_context>

<pallas_src>
import functools

import jax
import jax.numpy as jnp
from jax.experimental import pallas as pl
from jax.experimental.pallas import tpu as pltpu


LANE = 128  # TPU lane width (tiny last dims are packed into one 128-lane slab)


def _round_up(x, m):
    return ((x + m - 1) // m) * m


def _choose_tile_m(rows):
    """Row tile for the heads kernel.

    Aim for >=2 (ideally 4) row tiles so v7x's two TensorCores both get work,
    capped at 1024 so single-TC chips still get large overhead-amortizing
    tiles; multiple of 16 for bf16 sublane packing.
    """
    if rows <= 16:
        return _round_up(rows, 8)
    tile = _round_up(pl.cdiv(rows, 4), 16)
    return max(16, min(1024, tile))


# -----------------------------------------------------------------------------
# Kernel 1: detection heads
#   fused [cls Linear | bbox-MLP layer 1] matmul + bbox layers 2/3 + ref add
#   + sigmoid, emitting one lane-packed (TILE_M, 128) output:
#     lanes [0, C1)      -> classification logits
#     lanes [C1, C1 + 6) -> sigmoid boxes
# Grid axis 0 = row tiles over the flattened (L*B*Q) token dimension.
# -----------------------------------------------------------------------------
def _heads_kernel(c1, x_ref, ref_ref,
                  wf_ref, bf_ref,        # fused [cls(pad->128) | bbox layer 1]
                  w2_ref, b2_ref,        # bbox layer 2
                  w3_ref, b3_ref,        # bbox layer 3, box cols at lanes [c1,c1+6)
                  sel_ref,               # (8,128) scatter: ref lane i -> lane c1+i
                  out_ref):
    x = x_ref[...]                                        # (TILE_M, H), bf16

    # ---- fused matmul: [cls head (padded to 128 lanes) | bbox MLP layer 1] ----
    # bf16 operands, f32 accumulation (preferred_element_type).
    y = jnp.dot(x, wf_ref[...], preferred_element_type=jnp.float32) + bf_ref[...]
    logits = y[:, :LANE]                                  # f32, lanes [0, c1) valid
    h = jnp.maximum(y[:, LANE:], 0.0).astype(x.dtype)     # ReLU, back to bf16

    # ---- bbox MLP layers 2, 3 (bf16 operands, f32 accumulation) ----
    h = jnp.maximum(
        jnp.dot(h, w2_ref[...], preferred_element_type=jnp.float32) + b2_ref[...],
        0.0).astype(x.dtype)
    tmp = jnp.dot(h, w3_ref[...], preferred_element_type=jnp.float32) + b3_ref[...]

    # ---- inverse_sigmoid(reference) in f32, scattered to box lanes ----
    # ref_ref is (TILE_M, 8): 6 real lanes + 2 zero pad lanes.  The tiny
    # identity-scatter matmul moves it to lanes [c1, c1+6) of the packed slab
    # (padded lanes hit all-zero rows of sel and contribute nothing).
    r = jnp.clip(ref_ref[...].astype(jnp.float32), 0.0, 1.0)
    eps = 1e-5
    r_inv = jnp.log(jnp.maximum(r, eps) / jnp.maximum(1.0 - r, eps))
    ref_scat = jnp.dot(r_inv, sel_ref[...], preferred_element_type=jnp.float32)

    boxes = jax.nn.sigmoid(tmp + ref_scat)                # f32 epilogue

    lane = jax.lax.broadcasted_iota(jnp.int32, boxes.shape, 1)
    packed = jnp.where(lane < c1, logits, boxes)
    out_ref[...] = packed.astype(out_ref.dtype)


def detr_heads(hs, refs_all, pp):
    """hs: [L, B, Q, H]; refs_all: [L, B, Q, 6] (sigmoid-space references)."""
    L, B, Q, H = hs.shape
    C1 = pp["C1"]
    rows = L * B * Q
    cd = pp["compute_dtype"]

    # Flatten decoder levels into the row dim -> one large matmul; bf16 halves
    # the dominant x-tile HBM/VMEM traffic (accumulation stays f32 in-kernel).
    x = hs.reshape(rows, H).astype(cd)
    # 6 -> 8 lane pad only (full-last-dim block); the 128-lane padding happens
    # inside the kernel via the scatter matmul.
    refs8 = jnp.pad(refs_all.reshape(rows, 6).astype(jnp.float32), ((0, 0), (0, 2)))

    TILE_M = _choose_tile_m(rows)
    grid_m = pl.cdiv(rows, TILE_M)

    def const2d(arr):
        # Constant weight tile: same block for every grid step.
        return pl.BlockSpec(arr.shape, lambda i: (0, 0))

    kernel = functools.partial(_heads_kernel, C1)

    # NOTE: when rows % TILE_M != 0 the last partial tile computes
    # inverse_sigmoid/sigmoid on unspecified out-of-bounds rows; the output
    # writes for those rows are clipped/masked by the pipeline, so results are
    # correct and any NaN/Inf produced there is silently discarded by design.
    packed = pl.pallas_call(
        kernel,
        out_shape=jax.ShapeDtypeStruct((rows, LANE), jnp.float32),
        grid=(grid_m,),
        in_specs=[
            pl.BlockSpec((TILE_M, H), lambda i: (i, 0)),   # hidden states (bf16)
            pl.BlockSpec((TILE_M, 8), lambda i: (i, 0)),   # references (f32)
            const2d(pp["w_fused"]), const2d(pp["b_fused"]),
            const2d(pp["w2"]), const2d(pp["b2"]),
            const2d(pp["w3"]), const2d(pp["b3"]),
            const2d(pp["sel"]),
        ],
        out_specs=pl.BlockSpec((TILE_M, LANE), lambda i: (i, 0)),
        compiler_params=pltpu.CompilerParams(
            dimension_semantics=("parallel",),
            vmem_limit_bytes=32 * 1024 * 1024),
    )(x, refs8, pp["w_fused"], pp["b_fused"], pp["w2"], pp["b2"],
      pp["w3"], pp["b3"], pp["sel"])

    logits = packed[:, :C1].reshape(L, B, Q, C1)
    boxes = packed[:, C1:C1 + 6].reshape(L, B, Q, 6)
    return logits, boxes


# -----------------------------------------------------------------------------
# Kernel 2: seg-proxy head = 1x1x1 Conv3d on native NCDHW layout
#   out[b, :, s] = W^T (Cout, Cin) @ X[b] (Cin, S)  with S = D*H*W as lane dim
# Grid = (batch, spatial tiles); no transposes, lane-dense output stores.
# -----------------------------------------------------------------------------
def _seg_head_kernel(x_ref, wt_ref, b_ref, o_ref):
    # x_ref: (Cin, TILE_S), wt_ref: (Cout, Cin), b_ref: (Cout, 1)
    o = jnp.dot(wt_ref[...], x_ref[...], preferred_element_type=jnp.float32)
    o_ref[...] = (o + b_ref[...]).astype(o_ref.dtype)


def seg_proxy_head(p0_ncdhw, wt_seg, b_seg_col, *, out_dtype=None):
    """p0_ncdhw: [B, Cin, D, H, W] (PyTorch NCDHW). Returns [B, Cout, D, H, W].

    This head is pure HBM-BW bound (~2*Cout flops/byte), so the spatial tile is
    made as large as the VMEM budget allows.  bf16 inputs/outputs are supported
    (pass a bf16 p0 / out_dtype) when the consumer tolerates it.
    """
    B, Cin, D, H, W = p0_ncdhw.shape
    Cout = wt_seg.shape[0]
    S = D * H * W
    out_dtype = out_dtype or p0_ncdhw.dtype
    itemsize = max(jnp.dtype(p0_ncdhw.dtype).itemsize, jnp.dtype(out_dtype).itemsize)

    # Generation-aware tile budget: v7x has 64 MiB physical VMEM (32 MiB scoped
    # default), v5e/v6e have 128 MiB and slower HBM -> can hold bigger tiles.
    try:
        vmem_cap = pltpu.get_tpu_info().vmem_capacity_bytes
    except Exception:
        vmem_cap = 64 * 1024 * 1024          # conservative (v7x-safe) fallback
    if vmem_cap >= 128 * 1024 * 1024:
        tile_budget, max_tile_s = 32 * 1024 * 1024, 65536
    else:
        tile_budget, max_tile_s = 20 * 1024 * 1024, 32768

    x = p0_ncdhw.reshape(B, Cin, S)          # pure view of NCDHW, no relayout

    # Keep double-buffered in+out tiles within the budget:
    #   2 * (Cin + Cout) * TILE_S * itemsize <= tile_budget
    cap = tile_budget // (2 * (Cin + Cout) * itemsize)
    TILE_S = min(S, max_tile_s, max(128, (cap // 128) * 128))
    if TILE_S >= S:
        TILE_S = S                           # single full-extent tile
    grid_s = pl.cdiv(S, TILE_S)

    vmem_limit = max(32 * 1024 * 1024,
                     2 * (Cin + Cout) * TILE_S * itemsize + 4 * 1024 * 1024)

    out = pl.pallas_call(
        _seg_head_kernel,
        out_shape=jax.ShapeDtypeStruct((B, Cout, S), out_dtype),
        grid=(B, grid_s),
        in_specs=[
            pl.BlockSpec((None, Cin, TILE_S), lambda b, s: (b, 0, s)),
            pl.BlockSpec((Cout, Cin), lambda b, s: (0, 0)),
            pl.BlockSpec((Cout, 1), lambda b, s: (0, 0)),
        ],
        out_specs=pl.BlockSpec((None, Cout, TILE_S), lambda b, s: (b, 0, s)),
        compiler_params=pltpu.CompilerParams(
            dimension_semantics=("parallel", "parallel"),
            vmem_limit_bytes=vmem_limit),
    )(x, wt_seg, b_seg_col)

    return out.reshape(B, Cout, D, H, W)


# -----------------------------------------------------------------------------
# Parameter construction (deterministic, mirrors module __init__ shapes)
# -----------------------------------------------------------------------------
def make_params(key, hidden_dim, num_classes, start_channels, seg_out_channels):
    k = jax.random.split(key, 8)
    scale = 0.02
    params = {
        # _cls_head: nn.Linear(hidden_dim, num_classes + 1)
        "w_cls": scale * jax.random.normal(k[0], (hidden_dim, num_classes + 1), jnp.float32),
        "b_cls": jnp.zeros((1, num_classes + 1), jnp.float32),
        # _bbox_reg_head: MLP(hidden_dim, hidden_dim, 6, 3)
        "w1": scale * jax.random.normal(k[1], (hidden_dim, hidden_dim), jnp.float32),
        "b1": jnp.zeros((1, hidden_dim), jnp.float32),
        "w2": scale * jax.random.normal(k[2], (hidden_dim, hidden_dim), jnp.float32),
        "b2": jnp.zeros((1, hidden_dim), jnp.float32),
        # _reset_parameter(): last layer weight = 0, bias = 0, bias[2:] = -2.0
        "w3": jnp.zeros((hidden_dim, 6), jnp.float32),
        "b3": jnp.array([[0.0, 0.0, -2.0, -2.0, -2.0, -2.0]], jnp.float32),
        # _seg_head: nn.Conv3d(start_channels, seg_out_channels, 1)
        "w_seg": scale * jax.random.normal(k[3], (start_channels, seg_out_channels), jnp.float32),
        "b_seg": jnp.zeros((1, seg_out_channels), jnp.float32),
    }
    return params


def prep_inference_params(p, compute_dtype=jnp.bfloat16):
    """One-time (load-time) weight prep: fuse cls head with bbox layer 1, pack
    the 6-wide box columns into a 128-lane slab at offset C1, build the ref
    scatter matrix, cast matmul weights to bf16.  Hoisted out of forward()."""
    H, C1 = p["w_cls"].shape
    assert C1 + 6 <= LANE, "num_classes too large for single-slab packing"

    w_fused = jnp.concatenate(
        [jnp.pad(p["w_cls"], ((0, 0), (0, LANE - C1))), p["w1"]], axis=1)
    b_fused = jnp.concatenate(
        [jnp.pad(p["b_cls"], ((0, 0), (0, LANE - C1))), p["b1"]], axis=1)
    w3_packed = jnp.zeros((H, LANE), jnp.float32).at[:, C1:C1 + 6].set(p["w3"])
    b3_packed = jnp.zeros((1, LANE), jnp.float32).at[:, C1:C1 + 6].set(p["b3"])
    # scatter: (8-lane padded) reference lane i (<6) -> packed output lane C1+i
    sel = jnp.zeros((8, LANE), jnp.float32).at[
        jnp.arange(6), C1 + jnp.arange(6)].set(1.0)

    return {
        "C1": int(C1),
        "H": int(H),
        "compute_dtype": compute_dtype,
        "w_fused": w_fused.astype(compute_dtype),
        "b_fused": b_fused.astype(jnp.float32),
        "w2": p["w2"].astype(compute_dtype),
        "b2": p["b2"].astype(jnp.float32),
        "w3": w3_packed.astype(compute_dtype),
        "b3": b3_packed,
        "sel": sel,
        # seg head: (Cout, Cin) weight on the native layout + column bias
        "w_seg_t": p["w_seg"].T.astype(jnp.float32),
        "b_seg_col": p["b_seg"].reshape(-1, 1).astype(jnp.float32),
    }


# -----------------------------------------------------------------------------
# Pure-JAX reference (mirrors the PyTorch forward head loop) for verification
# -----------------------------------------------------------------------------
def _inverse_sigmoid(x, eps=1e-5):
    x = jnp.clip(x, 0.0, 1.0)
    return jnp.log(jnp.maximum(x, eps) / jnp.maximum(1.0 - x, eps))


def ref_heads(hs, refs_all, p, emulate_dtype=None):
    """Pure-JAX reference of the per-level head loop.  If emulate_dtype is set
    (e.g. bf16), operands are rounded the way the kernel rounds them so the
    comparison can use tight tolerances; with None it is the exact f32 module
    semantics."""
    if emulate_dtype is None:
        rd = lambda a: a
    else:
        rd = lambda a: a.astype(emulate_dtype).astype(jnp.float32)
    x = rd(hs)
    logits = x @ rd(p["w_cls"]) + p["b_cls"][0]
    h = rd(jax.nn.relu(x @ rd(p["w1"]) + p["b1"][0]))
    h = rd(jax.nn.relu(h @ rd(p["w2"]) + p["b2"][0]))
    tmp = h @ rd(p["w3"]) + p["b3"][0]
    boxes = jax.nn.sigmoid(tmp + _inverse_sigmoid(refs_all))
    return logits, boxes


def organdetr_forward(hs, init_reference, inter_references, p0, pp):
    """Head portion of OrganDetrNet.forward (inference path, no hybrid/dn)."""
    # references per level: lvl 0 -> init_reference, lvl>0 -> inter_references[lvl-1]
    refs_all = jnp.concatenate([init_reference[None], inter_references], axis=0)
    pred_logits, pred_boxes = detr_heads(hs, refs_all, pp)
    pred_seg = seg_proxy_head(p0, pp["w_seg_t"], pp["b_seg_col"])
    num_queries = hs.shape[2]
    out = {
        "pred_logits": pred_logits[-1][:, :num_queries],
        "pred_boxes": pred_boxes[-1][:, :num_queries],
        "pred_seg": pred_seg,
        "aux_outputs": [
            {"pred_logits": a, "pred_boxes": b}
            for a, b in zip(pred_logits[:-1], pred_boxes[:-1])
        ],
    }
    return out, pred_logits, pred_boxes, refs_all


if __name__ == "__main__":
    # Small config consistent with the module:
    L = 3            # decoder layers (neck.decoder.num_layers)
    B = 2            # batch
    Q = 8            # num_queries
    H = 32           # hidden_dim
    NUM_CLASSES = 4  # len(data_config['labels'])
    C1 = NUM_CLASSES + 1
    START_CH = 4     # backbone start_channels
    SEG_OUT = NUM_CLASSES + 1
    D = Hs = Ws = 8  # P0 spatial dims

    key = jax.random.PRNGKey(0)
    k_hs, k_ref0, k_refi, k_p0, k_par, k_w3, k_b3 = jax.random.split(key, 7)

    hs = jax.random.normal(k_hs, (L, B, Q, H), jnp.float32)
    init_reference = jax.nn.sigmoid(jax.random.normal(k_ref0, (B, Q, 6), jnp.float32))
    inter_references = jax.nn.sigmoid(
        jax.random.normal(k_refi, (L - 1, B, Q, 6), jnp.float32))
    p0 = jax.random.normal(k_p0, (B, START_CH, D, Hs, Ws), jnp.float32)  # NCDHW

    raw = make_params(k_par, H, NUM_CLASSES, START_CH, SEG_OUT)
    pp = prep_inference_params(raw)          # one-time prep, hoisted out of forward

    out, pred_logits, pred_boxes, refs_all = organdetr_forward(
        hs, init_reference, inter_references, p0, pp)
    jax.block_until_ready(out["pred_logits"])
    jax.block_until_ready(out["pred_boxes"])
    jax.block_until_ready(out["pred_seg"])

    # (a) tight check vs a reference that rounds operands to bf16 like the kernel
    ref_l_e, ref_b_e = ref_heads(hs, refs_all, raw, emulate_dtype=jnp.bfloat16)
    assert jnp.allclose(pred_logits, ref_l_e, atol=1e-4, rtol=1e-4)
    assert jnp.allclose(pred_boxes, ref_b_e, atol=1e-4, rtol=1e-4)

    # (b) loose check vs the exact f32 module semantics (bf16 matmul error only)
    ref_l, ref_b = ref_heads(hs, refs_all, raw)
    assert jnp.allclose(pred_logits, ref_l, atol=2e-2, rtol=2e-2)
    assert jnp.allclose(pred_boxes, ref_b, atol=2e-2, rtol=2e-2)

    # (c) exercise bbox-MLP layer 3 + reference add with nonzero w3/b3
    raw2 = dict(raw)
    raw2["w3"] = 0.02 * jax.random.normal(k_w3, (H, 6), jnp.float32)
    raw2["b3"] = 0.1 * jax.random.normal(k_b3, (1, 6), jnp.float32)
    lg2, bx2 = detr_heads(hs, refs_all, prep_inference_params(raw2))
    rl2, rb2 = ref_heads(hs, refs_all, raw2, emulate_dtype=jnp.bfloat16)
    assert jnp.allclose(lg2, rl2, atol=1e-4, rtol=1e-4)
    assert jnp.allclose(bx2, rb2, atol=1e-4, rtol=1e-4)

    # (d) seg-proxy head (f32 path)
    ref_seg = jnp.einsum("bcdhw,co->bodhw", p0, raw["w_seg"]) + \
        raw["b_seg"][0][None, :, None, None, None]
    assert jnp.allclose(out["pred_seg"], ref_seg, atol=1e-4, rtol=1e-4)

    assert out["pred_logits"].shape == (B, Q, C1)
    assert out["pred_boxes"].shape == (B, Q, 6)
    assert out["pred_seg"].shape == (B, SEG_OUT, D, Hs, Ws)
    assert len(out["aux_outputs"]) == L - 1

    print("KERNEL_OK")
</pallas_src>

<mosaic_0001>
module attributes {stable_mosaic.version = 11 : i64} {
  func.func @_heads_kernel(%arg0: i32, %arg1: memref<16x32xbf16, #tpu.memory_space<vmem>>, %arg2: memref<16x8xf32, #tpu.memory_space<vmem>>, %arg3: memref<32x160xbf16, #tpu.memory_space<vmem>>, %arg4: memref<1x160xf32, #tpu.memory_space<vmem>>, %arg5: memref<32x32xbf16, #tpu.memory_space<vmem>>, %arg6: memref<1x32xf32, #tpu.memory_space<vmem>>, %arg7: memref<32x128xbf16, #tpu.memory_space<vmem>>, %arg8: memref<1x128xf32, #tpu.memory_space<vmem>>, %arg9: memref<8x128xf32, #tpu.memory_space<vmem>>, %arg10: memref<16x128xf32, #tpu.memory_space<vmem>>) attributes {dimension_semantics = [#tpu.dimension_semantics<parallel>], iteration_bounds = array<i64: 3>, scalar_prefetch = 0 : i64, scratch_operands = 0 : i64, tpu.core_type = #tpu.core_type<tc>, window_params = [{transform_indices = @transform_0, window_bounds = array<i64: 16, 32>}, {transform_indices = @transform_1, window_bounds = array<i64: 16, 8>}, {pipeline_mode = #tpu.pipeline_mode<synchronous>, transform_indices = @transform_2, window_bounds = array<i64: 32, 160>}, {pipeline_mode = #tpu.pipeline_mode<synchronous>, transform_indices = @transform_3, window_bounds = array<i64: 1, 160>}, {pipeline_mode = #tpu.pipeline_mode<synchronous>, transform_indices = @transform_4, window_bounds = array<i64: 32, 32>}, {pipeline_mode = #tpu.pipeline_mode<synchronous>, transform_indices = @transform_5, window_bounds = array<i64: 1, 32>}, {pipeline_mode = #tpu.pipeline_mode<synchronous>, transform_indices = @transform_6, window_bounds = array<i64: 32, 128>}, {pipeline_mode = #tpu.pipeline_mode<synchronous>, transform_indices = @transform_7, window_bounds = array<i64: 1, 128>}, {pipeline_mode = #tpu.pipeline_mode<synchronous>, transform_indices = @transform_8, window_bounds = array<i64: 8, 128>}, {transform_indices = @transform_9, window_bounds = array<i64: 16, 128>}]} {
    %c0 = arith.constant 0 : index
    %c0_0 = arith.constant 0 : index
    %0 = vector.load %arg1[%c0, %c0_0] : memref<16x32xbf16, #tpu.memory_space<vmem>>, vector<16x32xbf16>
    %c0_1 = arith.constant 0 : index
    %c0_2 = arith.constant 0 : index
    %1 = vector.load %arg3[%c0_1, %c0_2] : memref<32x160xbf16, #tpu.memory_space<vmem>>, vector<32x160xbf16>
    %cst = arith.constant dense<0.000000e+00> : vector<16x160xf32>
    %2 = tpu.matmul %0, %1, %cst {dimension_numbers = #tpu.dot_dimension_numbers<[1], [0], [0], [1], [0, 0, 1, 1], [], []>} : vector<16x32xbf16>, vector<32x160xbf16>, vector<16x160xf32> -> vector<16x160xf32>
    %c0_3 = arith.constant 0 : index
    %c0_4 = arith.constant 0 : index
    %3 = vector.load %arg4[%c0_3, %c0_4] : memref<1x160xf32, #tpu.memory_space<vmem>>, vector<1x160xf32>
    %4 = vector.broadcast %3 : vector<1x160xf32> to vector<16x160xf32>
    %5 = arith.addf %2, %4 : vector<16x160xf32>
    %6 = vector.extract_strided_slice %5 {offsets = [0, 0], sizes = [16, 128], strides = [1, 1]} : vector<16x160xf32> to vector<16x128xf32>
    %7 = vector.extract_strided_slice %5 {offsets = [0, 128], sizes = [16, 32], strides = [1, 1]} : vector<16x160xf32> to vector<16x32xf32>
    %cst_5 = arith.constant 0.000000e+00 : f32
    %8 = vector.broadcast %cst_5 : f32 to vector<16x32xf32>
    %9 = arith.maximumf %7, %8 : vector<16x32xf32>
    %10 = arith.truncf %9 : vector<16x32xf32> to vector<16x32xbf16>
    %c0_6 = arith.constant 0 : index
    %c0_7 = arith.constant 0 : index
    %11 = vector.load %arg5[%c0_6, %c0_7] : memref<32x32xbf16, #tpu.memory_space<vmem>>, vector<32x32xbf16>
    %cst_8 = arith.constant dense<0.000000e+00> : vector<16x32xf32>
    %12 = tpu.matmul %10, %11, %cst_8 {dimension_numbers = #tpu.dot_dimension_numbers<[1], [0], [0], [1], [0, 0, 1, 1], [], []>} : vector<16x32xbf16>, vector<32x32xbf16>, vector<16x32xf32> -> vector<16x32xf32>
    %c0_9 = arith.constant 0 : index
    %c0_10 = arith.constant 0 : index
    %13 = vector.load %arg6[%c0_9, %c0_10] : memref<1x32xf32, #tpu.memory_space<vmem>>, vector<1x32xf32>
    %14 = vector.broadcast %13 : vector<1x32xf32> to vector<16x32xf32>
    %15 = arith.addf %12, %14 : vector<16x32xf32>
    %cst_11 = arith.constant 0.000000e+00 : f32
    %16 = vector.broadcast %cst_11 : f32 to vector<16x32xf32>
    %17 = arith.maximumf %15, %16 : vector<16x32xf32>
    %18 = arith.truncf %17 : vector<16x32xf32> to vector<16x32xbf16>
    %c0_12 = arith.constant 0 : index
    %c0_13 = arith.constant 0 : index
    %19 = vector.load %arg7[%c0_12, %c0_13] : memref<32x128xbf16, #tpu.memory_space<vmem>>, vector<32x128xbf16>
    %cst_14 = arith.constant dense<0.000000e+00> : vector<16x128xf32>
    %20 = tpu.matmul %18, %19, %cst_14 {dimension_numbers = #tpu.dot_dimension_numbers<[1], [0], [0], [1], [0, 0, 1, 1], [], []>} : vector<16x32xbf16>, vector<32x128xbf16>, vector<16x128xf32> -> vector<16x128xf32>
    %c0_15 = arith.constant 0 : index
    %c0_16 = arith.constant 0 : index
    %21 = vector.load %arg8[%c0_15, %c0_16] : memref<1x128xf32, #tpu.memory_space<vmem>>, vector<1x128xf32>
    %22 = vector.broadcast %21 : vector<1x128xf32> to vector<16x128xf32>
    %23 = arith.addf %20, %22 : vector<16x128xf32>
    %c0_17 = arith.constant 0 : index
    %c0_18 = arith.constant 0 : index
    %24 = vector.load %arg2[%c0_17, %c0_18] : memref<16x8xf32, #tpu.memory_space<vmem>>, vector<16x8xf32>
    %cst_19 = arith.constant 0.000000e+00 : f32
    %cst_20 = arith.constant 1.000000e+00 : f32
    %25 = vector.broadcast %cst_19 : f32 to vector<16x8xf32>
    %26 = arith.maximumf %25, %24 : vector<16x8xf32>
    %27 = vector.broadcast %cst_20 : f32 to vector<16x8xf32>
    %28 = arith.minimumf %27, %26 : vector<16x8xf32>
    %cst_21 = arith.constant 9.99999974E-6 : f32
    %29 = vector.broadcast %cst_21 : f32 to vector<16x8xf32>
    %30 = arith.maximumf %28, %29 : vector<16x8xf32>
    %cst_22 = arith.constant 1.000000e+00 : f32
    %31 = vector.broadcast %cst_22 : f32 to vector<16x8xf32>
    %32 = arith.subf %31, %28 : vector<16x8xf32>
    %cst_23 = arith.constant 9.99999974E-6 : f32
    %33 = vector.broadcast %cst_23 : f32 to vector<16x8xf32>
    %34 = arith.maximumf %32, %33 : vector<16x8xf32>
    %35 = arith.divf %30, %34 : vector<16x8xf32>
    %36 = math.log %35 : vector<16x8xf32>
    %c0_24 = arith.constant 0 : index
    %c0_25 = arith.constant 0 : index
    %37 = vector.load %arg9[%c0_24, %c0_25] : memref<8x128xf32, #tpu.memory_space<vmem>>, vector<8x128xf32>
    %cst_26 = arith.constant dense<0.000000e+00> : vector<16x128xf32>
    %38 = tpu.matmul %36, %37, %cst_26 {dimension_numbers = #tpu.dot_dimension_numbers<[1], [0], [0], [1], [0, 0, 1, 1], [], []>} : vector<16x8xf32>, vector<8x128xf32>, vector<16x128xf32> -> vector<16x128xf32>
    %39 = arith.addf %23, %38 : vector<16x128xf32>
    %40 = arith.negf %39 : vector<16x128xf32>
    %41 = math.exp %40 : vector<16x128xf32>
    %cst_27 = arith.constant 1.000000e+00 : f32
    %42 = vector.broadcast %cst_27 : f32 to vector<16x128xf32>
    %43 = arith.addf %42, %41 : vector<16x128xf32>
    %44 = arith.divf %42, %43 : vector<16x128xf32>
    %45 = tpu.iota {dimensions = array<i32: 1>} : vector<16x128xi32>
    %c5_i32 = arith.constant 5 : i32
    %46 = vector.broadcast %c5_i32 : i32 to vector<16x128xi32>
    %47 = arith.cmpi slt, %45, %46 : vector<16x128xi32>
    %48 = arith.select %47, %6, %44 : vector<16x128xi1>, vector<16x128xf32>
    %c0_28 = arith.constant 0 : index
    %c0_29 = arith.constant 0 : index
    %49 = vector.load %arg10[%c0_28, %c0_29] : memref<16x128xf32, #tpu.memory_space<vmem>>, vector<16x128xf32>
    tpu.vector_store %arg10[%c0_28, %c0_29], %48 {strides = array<i32>} : memref<16x128xf32, #tpu.memory_space<vmem>>, vector<16x128xf32>,
    return
  }
  func.func @transform_0(%arg0: i32) -> (i32, i32) {
    %c0_i32 = arith.constant 0 : i32
    %c0_i32_0 = arith.constant 0 : i32
    return %arg0, %c0_i32 : i32, i32
  }
  func.func @transform_1(%arg0: i32) -> (i32, i32) {
    %c0_i32 = arith.constant 0 : i32
    %c0_i32_0 = arith.constant 0 : i32
    return %arg0, %c0_i32 : i32, i32
  }
  func.func @transform_2(%arg0: i32) -> (i32, i32) {
    %c0_i32 = arith.constant 0 : i32
    %c0_i32_0 = arith.constant 0 : i32
    %c0_i32_1 = arith.constant 0 : i32
    return %c0_i32, %c0_i32_0 : i32, i32
  }
  func.func @transform_3(%arg0: i32) -> (i32, i32) {
    %c0_i32 = arith.constant 0 : i32
    %c0_i32_0 = arith.constant 0 : i32
    %c0_i32_1 = arith.constant 0 : i32
    return %c0_i32, %c0_i32_0 : i32, i32
  }
  func.func @transform_4(%arg0: i32) -> (i32, i32) {
    %c0_i32 = arith.constant 0 : i32
    %c0_i32_0 = arith.constant 0 : i32
    %c0_i32_1 = arith.constant 0 : i32
    return %c0_i32, %c0_i32_0 : i32, i32
  }
  func.func @transform_5(%arg0: i32) -> (i32, i32) {
    %c0_i32 = arith.constant 0 : i32
    %c0_i32_0 = arith.constant 0 : i32
    %c0_i32_1 = arith.constant 0 : i32
    return %c0_i32, %c0_i32_0 : i32, i32
  }
  func.func @transform_6(%arg0: i32) -> (i32, i32) {
    %c0_i32 = arith.constant 0 : i32
    %c0_i32_0 = arith.constant 0 : i32
    %c0_i32_1 = arith.constant 0 : i32
    return %c0_i32, %c0_i32_0 : i32, i32
  }
  func.func @transform_7(%arg0: i32) -> (i32, i32) {
    %c0_i32 = arith.constant 0 : i32
    %c0_i32_0 = arith.constant 0 : i32
    %c0_i32_1 = arith.constant 0 : i32
    return %c0_i32, %c0_i32_0 : i32, i32
  }
  func.func @transform_8(%arg0: i32) -> (i32, i32) {
    %c0_i32 = arith.constant 0 : i32
    %c0_i32_0 = arith.constant 0 : i32
    %c0_i32_1 = arith.constant 0 : i32
    return %c0_i32, %c0_i32_0 : i32, i32
  }
  func.func @transform_9(%arg0: i32) -> (i32, i32) {
    %c0_i32 = arith.constant 0 : i32
    %c0_i32_0 = arith.constant 0 : i32
    return %arg0, %c0_i32 : i32, i32
  }
}

</mosaic_0001>

<bundles_post_ra>
// kernel: tpu_custom_call.1
= control target key start
LH: loop header
LB: loop body
LE: loop exit
PB: predicated region body
PF: predicated region fallthrough
CT: control target
= control target key end

     0   :  { %14 = vsyncpa [#allocation3], 0  ;;  %s1113_s0 = inlined_call_operand.vmem [shape: bf16[48,32], index: 0, kind: input, shape index: {}]   ;;  %s1114_s1 = inlined_call_operand.vmem [shape: f32[48,8], index: 1, kind: input, shape index: {}]   ;;  %s1115_s2 = inlined_call_operand.vmem [shape: bf16[32,160], index: 2, kind: input, shape index: {}]   ;;  %s1116_s3 = inlined_call_operand.vmem [shape: f32[1,160], index: 3, kind: input, shape index: {}]   ;;  %s1117_s4 = inlined_call_operand.vmem [shape: bf16[32,32], index: 4, kind: input, shape index: {}]   ;;  %s1118_s5 = inlined_call_operand.vmem [shape: f32[1,32], index: 5, kind: input, shape index: {}]   ;;  %s1119_s6 = inlined_call_operand.vmem [shape: bf16[32,128], index: 6, kind: input, shape index: {}]   ;;  %s1120_s7 = inlined_call_operand.vmem [shape: f32[1,128], index: 7, kind: input, shape index: {}]   ;;  %s1121_s8 = inlined_call_operand.vmem [shape: f32[8,128], index: 8, kind: input, shape index: {}]   ;;  %s1122_s9 = inlined_call_operand.hbm [shape: f32[48,128], index: 9, kind: output, shape index: {}]  }
   0x1   :  { %16 = vsyncpa [#allocation3 + $0x1], 0  ;;  %s964_s30 = smov 0   ;;  %s966_s10 = smov 0  }
   0x2   :  { %s968_s11 = smov 0   ;;  %s970_s12 = smov 0  }
   0x3 LB: > { %s985_s13 = sadd.s32 4294967295, %s910_s12   ;;  %s720_s14 = sadd.s32 4294967294, %s910_s12   ;;  %s910_s12 = sphi %s970_s12, %s1128_s12   ;;  %s906_s11 = sphi %s968_s11, %s1127_s11   ;;  %s902_s10 = sphi %s966_s10, %s1126_s10   ;;  %s898_s30 = sphi %s964_s30, %s1125_s30  }
   0x4   : > { %s989_s15 = sadd.s32 1, %s910_s12   ;;  %s228_s16 = sadd.s32 1, %s906_s11 }
   0x5   : > { %s225_s17 = ssub.s32 %s910_s12, %s989_s15  ;;  %p238_p0 = scmp.ne.s32.totalorder %s906_s11, %s902_s10 }
   0x6   : > { %p226_p1 = scmp.eq.s32.totalorder %s225_s17, 0  ;;  %p239_p2 = scmp.eq.s32.totalorder %s985_s13, 2 }
   0x7   : > { %p244_p3 = scmp.ne.s32.totalorder %s902_s10, %s898_s30  ;;  %p245_p4 = scmp.eq.s32.totalorder %s720_s14, 2 }
   0x8   : > { %s1000_s18 = scalar_select %p226_p1, %s906_s11, %s228_s16  }
   0x9   : > { %p1002_p5 = por %p239_p2, %p238_p0  ;;  %p1006_p6 = por %p245_p4, %p244_p3 }
   0xa   : > { %p723_p7 = scmp.ge.s32.totalorder %s910_s12, 1  ;;  %p302_p8 = scmp.lt.s32.totalorder %s910_s12, 4 }
   0xc   : > { %p303_p9 = pnand %p723_p7, %p302_p8 }
   0xd   : > { %s725_s29 = sshll.u32 (!%p303_p9), %s985_s13, 1  ;;  %s787_s28 = sshll.u32 (!%p303_p9), %s985_s13, 4 }
   0xe   : > { %306 = sbr.rel (%p303_p9) target bundleno = 492 (0x1ec), region = 56  ;;  %p344_p10 = scmp.lt.s32.totalorder (!%p303_p9), %s725_s29, 5 }
   0xf   : > { %s642_s17 = scalar_lea.hbm (!%p303_p9), %s1122_s9, %s787_s28  ;;  %s868_s28 = scalar_lea.hbm (!%p303_p9), %s1122_s9, 48 }
  0x10   : > { %s645_s22 = sshll.u32 (!%p303_p9), %s642_s17, 4  ;;  %s646_s22 = int_to_ptr.hbm [resolvable:$true] %s645_s22 }
  0x13   : > { %v781_v0 = vld [vmem:[%s1115_s2 + $0x14] sm:$0xf]  ;;  %v745_v1 = vld [vmem:[%s1115_s2 + $0x18] sm:$0xf0]  ;;  %v779_v2 = vld [vmem:[%s1115_s2 + $0x4] sm:$0xf] }
  0x14   : > { %v748_v3 = vor.u32 %v781_v0, %v745_v1  ;;  %v737_v4 = vld [vmem:[%s1115_s2 + $0x8] sm:$0xf0]  ;;  %s1130_s29 = smov (!%p344_p10, %s725_s29), 5  ;;  %vm394_vm0 = vcmask 261120   ;;  %v783_v8 = vld [vmem:[%s1117_s4] sm:$0xff]  ;;  %vm553_vm9 = vcmask 64512  }
  0x15   : > { %v740_v5 = vor.u32 %v779_v2, %v737_v4  ;;  %s726_s14 = sshll.u32 %s1130_s29, 2  ;;  %v784_v7 = vld [vmem:[%s1117_s4 + $0x8] sm:$0xff]  ;;  %v743_v9 = vld [vmem:[%s1115_s2 + $0x10] sm:$0xf]  ;;  %v782_v10 = vld [vmem:[%s1115_s2 + $0x14] sm:$0xf0] }
  0x16   : > { %418 = vmatpush.bf16.msra.mxu1 %v748_v3  ;;  %s347_s21 = scalar_lea.vmem %s1113_s0, %s726_s14  ;;  %458 = vmatpush.bf16.msra.mxu2 %v784_v7  ;;  %v744_v11 = vor.u32 %v782_v10, %v743_v9  ;;  %v1044_v12 = vld [vmem:[%s1116_s3] sm:$0x3]  ;;  %v780_v33 = vld [vmem:[%s1115_s2 + $0x4] sm:$0xf0] }
  0x17   : > { %v778_v6 = vld [vmem:[%s347_s21] sm:$0xff]  ;;  %v366_v14 = vperm.slane %v1044_v12, 1  ;;  %s728_s21 = sshll.u32 %s1130_s29, 3  ;;  %v786_v37 = vld [vmem:[%s1119_s6 + $0x8] sm:$0xff]  ;;  %s340_s29 = sand.u32 1, %s902_s10  }
  0x18   : > { %404 = vmatpush.bf16.msra.mxu0 %v744_v11  ;;  %s353_s24 = scalar_lea.vmem %s1114_s1, %s728_s21  ;;  %v735_v32 = vld [vmem:[%s1115_s2] sm:$0xf]  ;;  %498 = vmatpush.bf16.msra.mxu3 %v786_v37  ;;  %s724_s27 = sshll.u32 %s340_s29, 4 }
  0x19   : > { %v506_v21 = vld [vmem:[%s353_s24] sm:$0xff]  ;;  %v507_v24 = vld [vmem:[%s353_s24 + $0x8] sm:$0xff]  ;;  %v736_v34 = vor.u32 %v780_v33, %v735_v32  ;;  %v365_v33 = vperm.slane %v1044_v12, 0  ;;  %s342_s21 = scalar_lea.vmem [#allocation2], %s724_s27  ;;  %s631_s23 = scalar_lea.sflag [#allocation3], %s340_s29 }
  0x1a   : > { %419 = vmatpush.bf16.msra.mxu1 %v740_v5  ;;  %459 = vmatpush.bf16.msra.mxu2 %v783_v8  ;;  %v508_v22 = vmax.f32 %v506_v21, 0.0  ;;  %v509_v25 = vmax.f32 %v507_v24, 0.0  ;;  %v785_v44 = vld [vmem:[%s1119_s6] sm:$0xff]  ;;  %s643_s13 = sshll.u32 %s342_s21, 4  ;;  %s862_s24 = sshra.s32 %s646_s22, 4  ;;  %s644_s13 = int_to_ptr.vmem [resolvable:$true] %s643_s13  ;;  %s863_s24 = int_to_ptr.hbm [resolvable:$true] %s862_s24 }
  0x1b   : > { %v552_v52 = vld [vmem:[%s1121_s8] sm:$0xff]  ;;  %s864_s25 = scalar_lea.hbm %s863_s24, 16  ;;  %p869_p0 = scmp.lt.s32.totalorder %s863_s24, %s1122_s9 }
  0x1c   : > { %v510_v23 = vmin.f32 %v508_v22, 1.0  ;;  %v511_v27 = vmin.f32 %v509_v25, 1.0  ;;  %405 = vmatpush.bf16.msra.mxu0 %v736_v34  ;;  %499 = vmatpush.bf16.msra.mxu3 %v785_v44  ;;  %v830_v2 = vld [vmem:[%s1118_s5] ss:$0 sm:$0xff]  ;;  %p865_p11 = scmp.ne.s32.totalorder %s863_s24, %s864_s25  ;;  %p870_p1 = scmp.lt.s32.totalorder %s868_s28, %s864_s25 }
  0x1d   : > { %750 = vmatmul.msk.bf16.vlgmr.msra.gmra.mxu1 %vm394_vm0, %v778_v6  ;;  %v831_v11 = vld [vmem:[%s1120_s7] ss:$0 sm:$0xff] }
  0x1e   : > { %v514_v26 = vsub.f32 1.0, %v510_v23  ;;  %v515_v29 = vsub.f32 1.0, %v511_v27  ;;  %v512_v45 = vmax.f32 %v510_v23, 1e-05  ;;  %788 = vmatpush.msrb.mxu1 %v552_v52  ;;  %v513_v56 = vmax.f32 %v511_v27, 1e-05  ;;  %p866_p12 = pnand %p865_p11, %p1002_p5  ;;  %p871_p2 = por %p870_p1, %p869_p0 }
  0x1f   : > { %749 = vmatmul.msk.bf16.vlgmr.msra.gmra.mxu0 %vm394_vm0, %v778_v6 }
  0x20   : > { %v516_v28 = vmax.f32 %v514_v26, 1e-05  ;;  %v517_v30 = vmax.f32 %v515_v29, 1e-05  ;;  %575 = vmatpush.msrb.mxu0 %v552_v52  ;;  %p867_p13 = pneg %p866_p12 }
  0x22   : > { %832 = vrcp.f32 %v516_v28  ;;  %v529_v40 = vand.u32 2147483648, %v516_v28  ;;  %vm523_vm1 = vweird.f32 %v516_v28  ;;  %v527_v42 = vand.u32 2147483647, %v516_v28  ;;  %p872_p3 = pnand %p871_p2, %p867_p13 }
  0x23   : > { %834 = vrcp.f32 %v517_v30  ;;  %vm538_vm5 = vweird.f32 %v517_v30  ;;  %v542_v54 = vand.u32 2147483647, %v517_v30  ;;  %v544_v55 = vand.u32 2147483648, %v517_v30 }
  0x24   : > { %v530_v43 = vor.u32 1.1754944e-38, %v529_v40  ;;  %vm528_vm4 = vcmp.eq.f32.partialorder %v527_v42, 8.507059e+37 }
  0x25   : > { %vm543_vm8 = vcmp.eq.f32.partialorder %v542_v54, 8.507059e+37  ;;  %v545_v58 = vor.u32 1.1754944e-38, %v544_v55 }
  0x28   : > { %v833_v31 = vpop.eup %832 }
  0x29   : > { %v519_v35 = vmul.f32 %v833_v31, %v516_v28  ;;  %v835_v39 = vpop.eup %834  ;;  %vm524_vm2 = vweird.f32 %v833_v31  ;;  %v623_v28 = vlaneseq }
  0x2a   : > { %vm525_vm3 = vmor %vm523_vm1, %vm524_vm2  ;;  %v534_v47 = vmul.f32 %v835_v39, %v517_v30  ;;  %vm539_vm6 = vweird.f32 %v835_v39 }
  0x2b   : > { %v520_v36 = vsub.f32 1.0, %v519_v35  ;;  %vm540_vm7 = vmor %vm538_vm5, %vm539_vm6  ;;  %v624_v32 = vand.u32 127, %v623_v28 }
  0x2c   : > { %v535_v50 = vsub.f32 1.0, %v534_v47 }
  0x2d   : > { %v521_v38 = vmul.f32 %v833_v31, %v520_v36  ;;  %vm625_vm13 = vcmp.lt.s32.totalorder %v624_v32, 5 }
  0x2e   : > { %v536_v51 = vmul.f32 %v835_v39, %v535_v50 }
  0x2f   : > { %v522_v41 = vadd.f32 %v833_v31, %v521_v38 }
  0x30   : > { %v537_v53 = vadd.f32 %v835_v39, %v536_v51 }
  0x31   : > { %v526_v46 = vsel %vm525_vm3, %v833_v31, %v522_v41 }
  0x32   : > { %v531_v48 = vsel %vm528_vm4, %v530_v43, %v526_v46  ;;  %v541_v57 = vsel %vm540_vm7, %v835_v39, %v537_v53 }
  0x33   : > { %v532_v49 = vmul.f32 %v531_v48, %v512_v45  ;;  %v546_v60 = vsel %vm543_vm8, %v545_v58, %v541_v57 }
  0x34   : > { %v547_v62 = vmul.f32 %v546_v60, %v513_v56 }
  0x35   : > { %836 = vlog2.f32 %v532_v49 }
  0x36   : > { %838 = vlog2.f32 %v547_v62 }
  0x3b   : > { %v837_v59 = vpop.eup %836 }
  0x3c   : > { %v549_v61 = vmul.f32 0.6931472, %v837_v59  ;;  %v839_v63 = vpop.eup %838 }
  0x3d   : > { %v551_v0 = vmul.f32 0.6931472, %v839_v63 }
  0x3e   : > { %769 = vmatmul.msk.f32.vlgmr.msrb.gmra.mxu0 %vm553_vm9, %v549_v61 }
  0x3f   : > { %770 = vmatmul.msk.f32.vlgmr.msrb.gmra.mxu1 %vm553_vm9, %v551_v0 }
  0x9a   : > { %v421_v13 = vpop.f32.mrf.mxu1 }
  0x9b   : > { %v422_v15 = vadd.f32 %v421_v13, %v366_v14 }
  0x9c   : > { %v407_v9 = vpop.f32.mrf.mxu0 }
  0x9d   : > { %v426_v18 = vmax.f32 %v422_v15, 0.0  ;;  %v408_v39 = vadd.f32 %v407_v9, %v365_v33 }
  0xa2   : > { %v423_v16 = vpop.f32.mrf.mxu1 }
  0xa3   : > { %v424_v17 = vadd.f32 %v423_v16, %v366_v14 }
  0xa4   : > { %v409_v10 = vpop.f32.mrf.mxu0 }
  0xa5   : > { %v427_v19 = vmax.f32 %v424_v17, 0.0  ;;  %v410_v49 = vadd.f32 %v409_v10, %v365_v33 }
  0xa7   : > { %v428_v20 = vpack.c.bf16 %v427_v19, %v426_v18 }
  0xa9   : > { %759 = vmatmul.msk.bf16.vlgmr.msra.gmra.mxu2 %vm394_vm0, %v428_v20 }
  0xbb   : > { %v577_v14 = vpop.f32.mrf.mxu0 }
  0xbc   : > { %v580_v19 = vpop.f32.mrf.mxu1 }
 0x12c   : > { %v461_v1 = vpop.f32.mrf.mxu2 }
 0x12d   : > { %v462_v3 = vadd.f32 %v830_v2, %v461_v1 }
 0x12f   : > { %v466_v6 = vmax.f32 %v462_v3, 0.0 }
 0x134   : > { %v463_v4 = vpop.f32.mrf.mxu2 }
 0x135   : > { %v464_v5 = vadd.f32 %v830_v2, %v463_v4 }
 0x137   : > { %v467_v7 = vmax.f32 %v464_v5, 0.0 }
 0x139   : > { %v468_v8 = vpack.c.bf16 %v467_v7, %v466_v6 }
 0x13b   : > { %768 = vmatmul.msk.bf16.vlgmr.msra.gmra.mxu3 %vm394_vm0, %v468_v8 }
 0x1be   : > { %v501_v13 = vpop.f32.mrf.mxu3 }
 0x1bf   : > { %v502_v15 = vadd.f32 %v831_v11, %v501_v13 }
 0x1c1   : > { %v583_v16 = vadd.f32 %v577_v14, %v502_v15 }
 0x1c3   : > { %v771_v17 = vmul.f32 -1.442695, %v583_v16 }
 0x1c5   : > { %840 = vpow2.f32 %v771_v17 }
 0x1c6   : > { %v503_v18 = vpop.f32.mrf.mxu3 }
 0x1c7   : > { %v504_v20 = vadd.f32 %v831_v11, %v503_v18 }
 0x1c9   : > { %v584_v21 = vadd.f32 %v580_v19, %v504_v20 }
 0x1cb   : > { %v841_v22 = vpop.eup %840  ;;  %v772_v23 = vmul.f32 -1.442695, %v584_v21 }
 0x1cc   : > { %v591_v24 = vadd.f32 1.0, %v841_v22 }
 0x1cd   : > { %842 = vpow2.f32 %v772_v23 }
 0x1ce   : > { %844 = vrcp.f32 %v591_v24  ;;  %v604_v31 = vand.u32 2147483648, %v591_v24  ;;  %v602_v35 = vand.u32 2147483647, %v591_v24  ;;  %vm598_vm11 = vweird.f32 %v591_v24 }
 0x1d0   : > { %v605_v38 = vor.u32 1.1754944e-38, %v604_v31  ;;  %vm603_vm14 = vcmp.eq.f32.partialorder %v602_v35, 8.507059e+37 }
 0x1d3   : > { %v843_v25 = vpop.eup %842 }
 0x1d4   : > { %v845_v26 = vpop.eup %844  ;;  %v592_v27 = vadd.f32 1.0, %v843_v25 }
 0x1d5   : > { %v594_v29 = vmul.f32 %v845_v26, %v591_v24  ;;  %vm599_vm10 = vweird.f32 %v845_v26 }
 0x1d6   : > { %846 = vrcp.f32 %v592_v27  ;;  %vm600_vm12 = vmor %vm598_vm11, %vm599_vm10  ;;  %v619_v44 = vand.u32 2147483648, %v592_v27  ;;  %v617_v46 = vand.u32 2147483647, %v592_v27  ;;  %vm613_vm0 = vweird.f32 %v592_v27 }
 0x1d7   : > { %v595_v30 = vsub.f32 1.0, %v594_v29 }
 0x1d8   : > { %v620_v48 = vor.u32 1.1754944e-38, %v619_v44  ;;  %vm618_vm2 = vcmp.eq.f32.partialorder %v617_v46, 8.507059e+37 }
 0x1d9   : > { %v596_v34 = vmul.f32 %v845_v26, %v595_v30 }
 0x1db   : > { %v597_v36 = vadd.f32 %v845_v26, %v596_v34 }
 0x1dc   : > { %v847_v37 = vpop.eup %846 }
 0x1dd   : > { %v609_v40 = vmul.f32 %v847_v37, %v592_v27  ;;  %v601_v41 = vsel %vm600_vm12, %v845_v26, %v597_v36  ;;  %vm614_vm15 = vweird.f32 %v847_v37 }
 0x1de   : > { %v606_v42 = vsel %vm603_vm14, %v605_v38, %v601_v41  ;;  %vm615_vm1 = vmor %vm613_vm0, %vm614_vm15 }
 0x1df   : > { %v610_v43 = vsub.f32 1.0, %v609_v40  ;;  %v626_v12 = vsel %vm625_vm13, %v408_v39, %v606_v42 }
 0x1e0   : > { %628 = vst [vmem:[%s342_s21] sm:$0xff] %v626_v12 }
 0x1e1   : > { %v611_v45 = vmul.f32 %v847_v37, %v610_v43 }
 0x1e3   : > { %v612_v47 = vadd.f32 %v847_v37, %v611_v45 }
 0x1e5   : > { %v616_v50 = vsel %vm615_vm1, %v847_v37, %v612_v47 }
 0x1e6   : > { %v621_v51 = vsel %vm618_vm2, %v620_v48, %v616_v50 }
 0x1e7   : > { %v627_v52 = vsel %vm625_vm13, %v410_v49, %v621_v51 }
 0x1e8   : > { %629 = vst [vmem:[%s342_s21 + $0x8] sm:$0xff] %v627_v52 }
 0x1e9   : > { %875 = shalt.err (!%p872_p3)
}
 0x1ea   : > { %s912_s29 = smov 128   ;;  %s913_s17 = smov 8  }
 0x1eb   : > { %789 = dma.vmem_to_hbm [thread:$0]  (%p1002_p5), %s644_s13, 256, %s646_s22, %s631_s23, %s912_s29, %s912_s29, %s913_s17  }
 0x1ec PF: > { %p795_p4 = scmp.ge.s32.totalorder %s910_s12, 2  ;;  %s660_s21 = sand.u32 1, %s898_s30  }
 0x1ed   : > { %s661_s26 = scalar_lea.sflag [#allocation3], %s660_s21 }
 0x1ee   : > { %p792_p7 = pnand %p795_p4, %p1006_p6 }
 0x1f0   : > { %p793_p8 = pneg %p792_p7 }
 0x1f2   : > { %893 = dma.done.wait (%p793_p8), %s661_s26, 256  }
 0x1f3   : > { %895 = vsyncadd (%p793_p8), %s661_s26, 4294967040  ;;  %p19_p9 = scmp.ge.s32.totalorder %s989_s15, 5   ;;  %s1125_s30 = smov %s902_s10 }
 0x1f4   : > { %s1126_s10 = smov %s906_s11  ;;  %s1127_s11 = smov %s1000_s18 }
 0x1f5   : > { %s1128_s12 = smov %s989_s15  ;;  %21 = sbr.rel (!%p19_p9) target bundleno = 3 (0x3), region = 94 }
 0x1fa   :  { %667 = vsyncpa [#allocation3], 1 }
 0x1fb   :  { %669 = vsyncpa [#allocation3 + $0x1], 1 }

</bundles_post_ra>
